<compile_context>
chip_gen: v5e
topology: v5e:2x2
jax: 0.10.0
libtpu: 0.0.40
codegen_flags: <defaults>
</compile_context>

<pallas_src>
import functools

import jax
import jax.numpy as jnp
from jax.experimental import pallas as pl
from jax.experimental.pallas import tpu as pltpu


def _nll_loss_kernel(pred_ref, tgt_ref, out_ref, acc_ref, *,
                     total_n, block_n, num_classes, steps_per_core):
    # pred_ref: (block_n, C) log-probs in VMEM (native dtype)
    # tgt_ref : (block_n, 1) i32 class indices in VMEM
    # out_ref : (1, 8, 128) f32 per-core partial-sum tile in VMEM
    # acc_ref : (block_n, C) f32 per-core VMEM accumulator (persists across grid steps)
    g = pl.program_id(0)          # "parallel" core axis
    s = pl.program_id(1)          # "arbitrary" reduction axis (steps on this core)

    @pl.when(s == 0)
    def _init():
        acc_ref[...] = jnp.zeros_like(acc_ref)

    # Nominal global row offset of this block (independent of the clamped index_map).
    base = (g * steps_per_core + s) * block_n

    tgt = tgt_ref[...]                                              # (block_n, 1) i32
    row = jax.lax.broadcasted_iota(jnp.int32, (block_n, 1), 0)      # cheap: 1/C of a pass
    tgt_eff = jnp.where(row + base < total_n, tgt, -1)              # invalid rows never match

    col = jax.lax.broadcasted_iota(jnp.int32, (block_n, num_classes), 1)
    pred = pred_ref[...]                                            # native dtype, no full upcast
    zero = jnp.asarray(0, dtype=pred.dtype)
    sel = jnp.where(col == tgt_eff, pred, zero)                     # one nonzero per valid row

    # Pure-VPU accumulation each step; cross-lane reduce deferred to the finalize.
    acc_ref[...] += sel.astype(jnp.float32)

    @pl.when(s == steps_per_core - 1)
    def _finalize():
        total = jnp.sum(acc_ref[...])                               # one XLU reduce per core
        out_ref[...] = jnp.broadcast_to(total, (1, 8, 128))         # lane-dense unmasked store


def nll_loss(pred, target, trans_feat=None, *, block_rows=None,
             block_bytes=2 * 1024 * 1024):
    """Pallas TPU implementation of get_loss.forward(pred, target, trans_feat)."""
    del trans_feat  # unused, as in the reference module
    n, c = pred.shape
    tgt2d = target.astype(jnp.int32).reshape(n, 1)

    # Byte-targeted block size: ~block_bytes of pred per grid step (HBM-read roofline).
    if block_rows is None:
        row_bytes = c * pred.dtype.itemsize
        block_rows = max(8, (block_bytes // max(1, row_bytes)) // 8 * 8)
    block_rows = int(block_rows)

    if n <= block_rows:
        block_n = n                                   # single block: full-dim shape, no (8,128) trap
    else:
        block_n = max(8, (block_rows // 8) * 8)       # tiled: keep sublane-aligned

    num_blocks = int(pl.cdiv(n, block_n))
    # Leading "parallel" axis: 2 TensorCores on v7x; harmless serial loop on v5e/v6e.
    num_cores = 2 if num_blocks >= 2 else 1
    steps = int(pl.cdiv(num_blocks, num_cores))
    last_block = num_blocks - 1

    def in_idx(gidx, sidx):
        # Clamp so padded iterations re-read a valid block (fully masked in-kernel)
        # instead of issuing an out-of-bounds DMA.
        return (jnp.minimum(gidx * steps + sidx, last_block), 0)

    kernel = functools.partial(
        _nll_loss_kernel, total_n=n, block_n=block_n,
        num_classes=c, steps_per_core=steps)

    cost = pl.CostEstimate(
        flops=3 * n * c,
        transcendentals=0,
        bytes_accessed=n * c * pred.dtype.itemsize + n * 4 + num_cores * 8 * 128 * 4)

    partials = pl.pallas_call(
        kernel,
        grid=(num_cores, steps),
        out_shape=jax.ShapeDtypeStruct((num_cores, 8, 128), jnp.float32),
        in_specs=[
            pl.BlockSpec((block_n, c), in_idx),
            pl.BlockSpec((block_n, 1), in_idx),
        ],
        out_specs=pl.BlockSpec((1, 8, 128), lambda gidx, sidx: (gidx, 0, 0)),
        scratch_shapes=[pltpu.VMEM((block_n, c), jnp.float32)],
        compiler_params=pltpu.CompilerParams(
            dimension_semantics=("parallel", "arbitrary"),
            vmem_limit_bytes=32 * 1024 * 1024),
        cost_estimate=cost,
    )(pred, tgt2d)

    # F.nll_loss default reduction='mean', negated; tiny cross-core combine in the wrapper.
    return jnp.sum(partials[:, 0, 0]) * jnp.float32(-1.0 / n)


if __name__ == "__main__":
    key = jax.random.PRNGKey(0)
    k1, k2, k3, k4, k5, k6, k7 = jax.random.split(key, 7)

    # --- small shapes matching the module (classifier emits log-probs) ---
    N, C = 8, 16
    logits = jax.random.normal(k1, (N, C), dtype=jnp.float32)
    pred = jax.nn.log_softmax(logits, axis=-1)
    target = jax.random.randint(k2, (N,), 0, C, dtype=jnp.int32)
    trans_feat = jax.random.normal(k3, (N, 3, 3), dtype=jnp.float32)  # unused

    loss = jax.block_until_ready(nll_loss(pred, target, trans_feat))
    ref = -jnp.mean(pred[jnp.arange(N), target])
    assert jnp.allclose(loss, ref, atol=1e-6), (loss, ref)

    # --- multi-block path: parallel core axis + partial / duplicated-block masking ---
    N2, C2 = 20, 16
    logits2 = jax.random.normal(k4, (N2, C2), dtype=jnp.float32)
    pred2 = jax.nn.log_softmax(logits2, axis=-1)
    target2 = jax.random.randint(k5, (N2,), 0, C2, dtype=jnp.int32)

    loss2 = jax.block_until_ready(nll_loss(pred2, target2, None, block_rows=8))
    ref2 = -jnp.mean(pred2[jnp.arange(N2), target2])
    assert jnp.allclose(loss2, ref2, atol=1e-6), (loss2, ref2)

    # --- bf16 input, ModelNet-like class count, uneven blocks per core ---
    N3, C3 = 50, 40
    logits3 = jax.random.normal(k6, (N3, C3), dtype=jnp.float32)
    pred3 = jax.nn.log_softmax(logits3, axis=-1).astype(jnp.bfloat16)
    target3 = jax.random.randint(k7, (N3,), 0, C3, dtype=jnp.int32)

    loss3 = jax.block_until_ready(nll_loss(pred3, target3, None, block_rows=16))
    ref3 = -jnp.mean(pred3.astype(jnp.float32)[jnp.arange(N3), target3])
    assert jnp.allclose(loss3, ref3, atol=1e-5), (loss3, ref3)

    print("KERNEL_OK")
</pallas_src>

<mosaic_0001>
module attributes {stable_mosaic.version = 11 : i64} {
  func.func @_nll_loss_kernel(%arg0: i32, %arg1: i32, %arg2: memref<8x16xf32, #tpu.memory_space<vmem>>, %arg3: memref<8x1xi32, #tpu.memory_space<vmem>>, %arg4: memref<1x8x128xf32, #tpu.memory_space<vmem>>, %arg5: memref<8x16xf32, #tpu.memory_space<vmem>>) attributes {dimension_semantics = [#tpu.dimension_semantics<parallel>, #tpu.dimension_semantics<arbitrary>], iteration_bounds = array<i64: 1, 1>, scalar_prefetch = 0 : i64, scratch_operands = 1 : i64, tpu.core_type = #tpu.core_type<tc>, window_params = [{transform_indices = @transform_0, window_bounds = array<i64: 8, 16>}, {transform_indices = @transform_1, window_bounds = array<i64: 8, 1>}, {transform_indices = @transform_2, window_bounds = array<i64: 1, 8, 128>}]} {
    %c0_i32 = arith.constant 0 : i32
    %0 = arith.cmpi eq, %arg1, %c0_i32 : i32
    %1 = arith.extui %0 : i1 to i32
    %c0_i32_0 = arith.constant 0 : i32
    %2 = arith.cmpi ne, %1, %c0_i32_0 : i32
    scf.if %2 {
      %cst_11 = arith.constant 0.000000e+00 : f32
      %26 = vector.broadcast %cst_11 : f32 to vector<8x16xf32>
      %c0_12 = arith.constant 0 : index
      %c0_13 = arith.constant 0 : index
      %27 = vector.load %arg5[%c0_12, %c0_13] : memref<8x16xf32, #tpu.memory_space<vmem>>, vector<8x16xf32>
      tpu.vector_store %arg5[%c0_12, %c0_13], %26 {strides = array<i32>} : memref<8x16xf32, #tpu.memory_space<vmem>>, vector<8x16xf32>,
    } else {
    }
    %c1_i32 = arith.constant 1 : i32
    %3 = arith.muli %arg0, %c1_i32 : i32
    %4 = arith.addi %3, %arg1 : i32
    %c8_i32 = arith.constant 8 : i32
    %5 = arith.muli %4, %c8_i32 : i32
    %c0 = arith.constant 0 : index
    %c0_1 = arith.constant 0 : index
    %6 = vector.load %arg3[%c0, %c0_1] : memref<8x1xi32, #tpu.memory_space<vmem>>, vector<8x1xi32>
    %7 = tpu.iota {dimensions = array<i32: 0>} : vector<8x1xi32>
    %8 = vector.broadcast %5 : i32 to vector<8x1xi32>
    %9 = arith.addi %7, %8 : vector<8x1xi32>
    %c8_i32_2 = arith.constant 8 : i32
    %10 = vector.broadcast %c8_i32_2 : i32 to vector<8x1xi32>
    %11 = arith.cmpi slt, %9, %10 : vector<8x1xi32>
    %c-1_i32 = arith.constant -1 : i32
    %12 = vector.broadcast %c-1_i32 : i32 to vector<8x1xi32>
    %13 = arith.select %11, %6, %12 : vector<8x1xi1>, vector<8x1xi32>
    %14 = tpu.iota {dimensions = array<i32: 1>} : vector<8x16xi32>
    %c0_3 = arith.constant 0 : index
    %c0_4 = arith.constant 0 : index
    %15 = vector.load %arg2[%c0_3, %c0_4] : memref<8x16xf32, #tpu.memory_space<vmem>>, vector<8x16xf32>
    %16 = vector.broadcast %13 : vector<8x1xi32> to vector<8x16xi32>
    %17 = arith.cmpi eq, %14, %16 : vector<8x16xi32>
    %cst = arith.constant 0.000000e+00 : f32
    %18 = vector.broadcast %cst : f32 to vector<8x16xf32>
    %19 = arith.select %17, %15, %18 : vector<8x16xi1>, vector<8x16xf32>
    %c0_5 = arith.constant 0 : index
    %c0_6 = arith.constant 0 : index
    %20 = vector.load %arg5[%c0_5, %c0_6] : memref<8x16xf32, #tpu.memory_space<vmem>>, vector<8x16xf32>
    %21 = arith.addf %20, %19 : vector<8x16xf32>
    %c0_7 = arith.constant 0 : index
    %c0_8 = arith.constant 0 : index
    %22 = vector.load %arg5[%c0_7, %c0_8] : memref<8x16xf32, #tpu.memory_space<vmem>>, vector<8x16xf32>
    tpu.vector_store %arg5[%c0_7, %c0_8], %21 {strides = array<i32>} : memref<8x16xf32, #tpu.memory_space<vmem>>, vector<8x16xf32>,
    %c0_i32_9 = arith.constant 0 : i32
    %23 = arith.cmpi eq, %arg1, %c0_i32_9 : i32
    %24 = arith.extui %23 : i1 to i32
    %c0_i32_10 = arith.constant 0 : i32
    %25 = arith.cmpi ne, %24, %c0_i32_10 : i32
    scf.if %25 {
      %c0_11 = arith.constant 0 : index
      %c0_12 = arith.constant 0 : index
      %26 = vector.load %arg5[%c0_11, %c0_12] : memref<8x16xf32, #tpu.memory_space<vmem>>, vector<8x16xf32>
      %27 = vector.shape_cast %26 : vector<8x16xf32> to vector<1x8x16xf32>
      %cst_13 = arith.constant dense<0.000000e+00> : vector<1xf32>
      %28 = vector.multi_reduction <add>, %27, %cst_13 [1, 2] : vector<1x8x16xf32> to vector<1xf32>
      %29 = vector.shape_cast %28 : vector<1xf32> to vector<1x1x1xf32>
      %30 = vector.extract %29[0, 0, 0] : f32 from vector<1x1x1xf32>
      %31 = vector.broadcast %30 : f32 to vector<1x8x128xf32>
      %c0_14 = arith.constant 0 : index
      %c0_15 = arith.constant 0 : index
      %c0_16 = arith.constant 0 : index
      %32 = vector.load %arg4[%c0_14, %c0_15, %c0_16] : memref<1x8x128xf32, #tpu.memory_space<vmem>>, vector<1x8x128xf32>
      tpu.vector_store %arg4[%c0_14, %c0_15, %c0_16], %31 {strides = array<i32>} : memref<1x8x128xf32, #tpu.memory_space<vmem>>, vector<1x8x128xf32>,
    } else {
    }
    return
  }
  func.func @transform_0(%arg0: i32, %arg1: i32) -> (i32, i32) {
    %c1_i32 = arith.constant 1 : i32
    %0 = arith.muli %arg0, %c1_i32 : i32
    %1 = arith.addi %0, %arg1 : i32
    %c0_i32 = arith.constant 0 : i32
    %2 = arith.minsi %1, %c0_i32 : i32
    %c0_i32_0 = arith.constant 0 : i32
    %c0_i32_1 = arith.constant 0 : i32
    return %2, %c0_i32_0 : i32, i32
  }
  func.func @transform_1(%arg0: i32, %arg1: i32) -> (i32, i32) {
    %c1_i32 = arith.constant 1 : i32
    %0 = arith.muli %arg0, %c1_i32 : i32
    %1 = arith.addi %0, %arg1 : i32
    %c0_i32 = arith.constant 0 : i32
    %2 = arith.minsi %1, %c0_i32 : i32
    %c0_i32_0 = arith.constant 0 : i32
    %c0_i32_1 = arith.constant 0 : i32
    return %2, %c0_i32_0 : i32, i32
  }
  func.func @transform_2(%arg0: i32, %arg1: i32) -> (i32, i32, i32) {
    %c0_i32 = arith.constant 0 : i32
    %c0_i32_0 = arith.constant 0 : i32
    %c0_i32_1 = arith.constant 0 : i32
    return %arg0, %c0_i32, %c0_i32_0 : i32, i32, i32
  }
}

</mosaic_0001>

<bundles_post_ra>
// kernel: tpu_custom_call.1
= control target key start
LH: loop header
LB: loop body
LE: loop exit
PB: predicated region body
PF: predicated region fallthrough
CT: control target
= control target key end

     0   :  { %s196_s0 = inlined_call_operand.vmem [shape: f32[8,16], index: 0, kind: input, shape index: {}]   ;;  %s197_s1 = inlined_call_operand.vmem [shape: s32[8,1], index: 1, kind: input, shape index: {}]   ;;  %s198_s2 = inlined_call_operand.hbm [shape: f32[1,8,128], index: 2, kind: output, shape index: {}]  }
   0x1   :  { %v74_v0 = vld [vmem:[%s197_s1] sm:$0xff] }
   0x2   :  { %7 = vsyncpa [#allocation4], 0  ;;  %v169_v1 = vmov 0   ;;  %vm70_vm0 = vcmask 130048   ;;  %v170_v2 = vmov 0.0   ;;  %v81_v3 = vlaneseq  ;;  %v83_v5 = vld [vmem:[%s196_s0] sm:$0xff] }
   0x3   :  { %142 = vset.pattern.permute.xlu0 %v169_v1  ;;  %71 = vst.msk [vmem:[#allocation2] sm:$0xff] %vm70_vm0, %v170_v2  ;;  %s171_s1 = smov [#allocation3]   ;;  %s116_s15 = sshll.u32 %s198_s2, 4  ;;  %s117_s15 = int_to_ptr.hbm [resolvable:$true] %s116_s15 }
   0x4   :  { %85 = vperm.xlu0 %142, %v74_v0   ;;  %v82_v4 = vand.u32 127, %v81_v3  ;;  %s114_s13 = sshll.u32 %s171_s1, 4  ;;  %s115_s13 = int_to_ptr.vmem [resolvable:$true] %s114_s13 }
   0xa   :  { %v89_v7 = vld [vmem:[#allocation2] sm:$0xff] }
  0x76   :  { %v86_v6 = vpop.permute.xlu0 %85 }
  0x77   :  { %vm87_vm1 = vcmp.eq.s32.totalorder %v82_v4, %v86_v6 }
  0x78   :  { %v88_v8 = vsel %vm87_vm1, %v83_v5, 0.0 }
  0x79   :  { %v90_v9 = vadd.f32 %v89_v7, %v88_v8 }
  0x7b   :  { %92 = vst.msk [vmem:[#allocation2] sm:$0xff] %vm70_vm0, %v90_v9 }
  0x82   :  { %v96_v10 = vld [vmem:[#allocation2] sm:$0xff] }
  0x83   :  { %v97_v11 = vsel %vm70_vm0, %v96_v10, 0.0 }
  0x84   :  { %98 = vadd.xlane.f32.xlu0 %v97_v11 }
  0xf7   :  { %v99_v12 = vpop.xlane.xlu0 %98 }
  0xf8   :  { %v100_v13 = vrot.slane %v99_v12, 4 }
  0xfa   :  { %v101_v14 = vadd.f32 %v100_v13, %v99_v12 }
  0xfc   :  { %v102_v15 = vrot.slane %v101_v14, 2 }
  0xfe   :  { %v103_v16 = vadd.f32 %v102_v15, %v101_v14 }
 0x100   :  { %v104_v17 = vrot.slane %v103_v16, 1 }
 0x102   :  { %v105_v18 = vadd.f32 %v104_v17, %v103_v16 }
 0x104   :  { %137 = vpush %v105_v18 }
 0x135   :  { %s138_s16 = spop %137 }
 0x136   :  { %v107_v19 = vstv %s138_s16 }
 0x137   :  { %108 = vst [vmem:[#allocation3] sm:$0xff] %v107_v19 }
 0x138   :  { %119 = dma.vmem_to_hbm [thread:$0]  %s115_s13, 128, %s117_s15, [#allocation4]  }
 0x139   :  { %167 = dma.done.wait [#allocation4], 128  }
 0x13a   :  { %168 = vsyncadd [#allocation4], 4294967168 }
 0x13b   :  { %124 = vsyncpa [#allocation4], 1 }

</bundles_post_ra>
